<compile_context>
chip_gen: v6e
topology: v6e:2x2x1
jax: 0.10.0
libtpu: 0.0.40
codegen_flags: <defaults>
</compile_context>

<pallas_src>
import functools
import math

import numpy as np
import jax
import jax.numpy as jnp
from jax.experimental import pallas as pl
from jax.experimental.pallas import tpu as pltpu

D_MODEL = 32
MAX_LEN = 16
DROPOUT_RATE = 0.0  # eval-mode semantics: dropout is identity
# TODO(synk): training-mode dropout (p>0) would need pltpu.prng_seed/prng_random_bits;
# eval-mode (identity) semantics are implemented here.

_LANES = 128            # vreg lane width
_SUBLANES = 8           # vreg sublane count (f32)
_MAX_BLOCK_ROWS = 4096  # 4096x128 f32 = 2 MiB per block (in+out dbl-buffered ~8 MiB VMEM)


def _cdiv(a, b):
    return -(-a // b)


def _round_up(a, b):
    return _cdiv(a, b) * b


def _scale_kernel(x_ref, o_ref, *, xscale):
    # Hot path: one vmul per vreg.  Mem-bound; nothing else to do here.
    o_ref[...] = x_ref[...] * xscale


def _choose_block_rows(rows):
    """Pick a static block row count.

    Tiny inputs -> one block equal to the full array (block dim == array dim
    satisfies the (8,128) rule even when rows % 8 != 0).  Larger inputs ->
    at least two grid steps (so v7x megacore sharding via "parallel" engages),
    capped at _MAX_BLOCK_ROWS so VMEM stays small on every generation.
    """
    if rows <= 2 * _SUBLANES:
        return rows
    half = _round_up(_cdiv(rows, 2), _SUBLANES)
    return min(_MAX_BLOCK_ROWS, half)


def _scale_pallas(x, xscale):
    """Compute x * xscale with a gridded Pallas kernel (no pad/slice copies)."""
    orig_shape = x.shape
    total = x.size

    if total % _LANES == 0:
        # Fast path (covers this module's shapes): lane-dense (rows, 128) view,
        # full-width vst stores.
        cols = _LANES
        rows = total // _LANES
    else:
        # Ragged fallback: operate on the native (rows, d) view.  No padded
        # copy; stores are lane-masked when d < 128 but bytes moved stay 1x.
        cols = orig_shape[-1]
        rows = total // cols

    x2 = x.reshape(rows, cols)
    block_rows = _choose_block_rows(rows)
    grid = (_cdiv(rows, block_rows),)

    out = pl.pallas_call(
        functools.partial(_scale_kernel, xscale=xscale),
        out_shape=jax.ShapeDtypeStruct((rows, cols), x.dtype),
        grid=grid,
        in_specs=[pl.BlockSpec((block_rows, cols), lambda i: (i, 0))],
        out_specs=pl.BlockSpec((block_rows, cols), lambda i: (i, 0)),
        # In-place update of the (reshaped) input buffer; with the pad removed
        # this aliases real data, not a throwaway temp.
        input_output_aliases={0: 0},
        compiler_params=pltpu.CompilerParams(
            dimension_semantics=("parallel",)),
    )(x2)

    return out.reshape(orig_shape)


def _build_pe_host(d_model, max_len):
    """Sinusoidal PE table built on the host (numpy) -> baked as a literal.

    pe[t, 2k]   = sin(t * exp(-2k * ln(10000)/d_model))
    pe[t, 2k+1] = cos(t * exp(-2k * ln(10000)/d_model))

    Matches the given PyTorch module: forward returns the full (1, max_len,
    d_model) table (extend_pe is only called in __init__), not a symmetric
    2*t-1 relative table.
    """
    assert d_model % 2 == 0, "d_model must be even for sin/cos interleaving"
    position = np.arange(max_len, dtype=np.float32)[:, None]          # (L, 1)
    div_term = np.exp(
        np.arange(0, d_model, 2, dtype=np.float32)
        * -(math.log(10000.0) / d_model))                             # (d/2,)
    angle = position * div_term                                       # (L, d/2)
    pe = np.zeros((max_len, d_model), dtype=np.float32)
    pe[:, 0::2] = np.sin(angle)
    pe[:, 1::2] = np.cos(angle)
    return pe[None]                                                   # (1, L, d)


@functools.partial(jax.jit, static_argnames=("d_model", "max_len"))
def rel_positional_encoding(x, *, d_model=D_MODEL, max_len=MAX_LEN):
    """Forward pass of RelPositionalEncoding (eval mode).

    Args:
      x: (batch, time, d_model) float32.
    Returns:
      (x * sqrt(d_model), pos_emb) where pos_emb has shape (1, max_len, d_model).
    """
    b, t, d = x.shape
    assert d == d_model
    xscale = math.sqrt(d_model)

    scaled = _scale_pallas(x, xscale)
    # Constant (trace-time numpy) -> zero runtime ops for the pos_emb path.
    pos_emb = jnp.asarray(_build_pe_host(d_model, max_len))
    return scaled, pos_emb


def _reference(x, d_model=D_MODEL, max_len=MAX_LEN):
    """Pure-JAX reference mirroring the PyTorch module (eval mode)."""
    xscale = math.sqrt(d_model)
    position = jnp.arange(max_len, dtype=jnp.float32)[:, None]
    div_term = jnp.exp(
        jnp.arange(0, d_model, 2, dtype=jnp.float32)
        * -(math.log(10000.0) / d_model))
    pe = jnp.zeros((max_len, d_model), jnp.float32)
    pe = pe.at[:, 0::2].set(jnp.sin(position * div_term))
    pe = pe.at[:, 1::2].set(jnp.cos(position * div_term))
    return x * xscale, pe[None]


if __name__ == "__main__":
    key = jax.random.PRNGKey(0)
    batch, time = 2, 8
    x = jax.random.normal(key, (batch, time, D_MODEL), dtype=jnp.float32)

    ref_x, ref_pe = _reference(x)

    out_x, out_pe = rel_positional_encoding(x)
    out_x = jax.block_until_ready(out_x)
    out_pe = jax.block_until_ready(out_pe)

    assert out_x.shape == (batch, time, D_MODEL)
    assert out_pe.shape == (1, MAX_LEN, D_MODEL)
    assert jnp.allclose(out_x, ref_x, atol=1e-5, rtol=1e-5)
    assert jnp.allclose(out_pe, ref_pe, atol=1e-5, rtol=1e-5)

    print("KERNEL_OK")
</pallas_src>

<mosaic_0001>
module attributes {stable_mosaic.version = 11 : i64} {
  func.func @_scale_kernel(%arg0: i32, %arg1: memref<4x128xf32, #tpu.memory_space<vmem>>, %arg2: memref<4x128xf32, #tpu.memory_space<vmem>>) attributes {dimension_semantics = [#tpu.dimension_semantics<parallel>], iteration_bounds = array<i64: 1>, scalar_prefetch = 0 : i64, scratch_operands = 0 : i64, tpu.core_type = #tpu.core_type<tc>, window_params = [{transform_indices = @transform_0, window_bounds = array<i64: 4, 128>}, {transform_indices = @transform_1, window_bounds = array<i64: 4, 128>}]} {
    %c0 = arith.constant 0 : index
    %c0_0 = arith.constant 0 : index
    %0 = vector.load %arg1[%c0, %c0_0] : memref<4x128xf32, #tpu.memory_space<vmem>>, vector<4x128xf32>
    %cst = arith.constant 5.65685415 : f32
    %1 = vector.broadcast %cst : f32 to vector<4x128xf32>
    %2 = arith.mulf %0, %1 : vector<4x128xf32>
    %c0_1 = arith.constant 0 : index
    %c0_2 = arith.constant 0 : index
    %3 = vector.load %arg2[%c0_1, %c0_2] : memref<4x128xf32, #tpu.memory_space<vmem>>, vector<4x128xf32>
    tpu.vector_store %arg2[%c0_1, %c0_2], %2 {strides = array<i32>} : memref<4x128xf32, #tpu.memory_space<vmem>>, vector<4x128xf32>,
    return
  }
  func.func @transform_0(%arg0: i32) -> (i32, i32) {
    %c0_i32 = arith.constant 0 : i32
    %c0_i32_0 = arith.constant 0 : i32
    return %arg0, %c0_i32 : i32, i32
  }
  func.func @transform_1(%arg0: i32) -> (i32, i32) {
    %c0_i32 = arith.constant 0 : i32
    %c0_i32_0 = arith.constant 0 : i32
    return %arg0, %c0_i32 : i32, i32
  }
}

</mosaic_0001>

<bundles_post_ra>
// kernel: rel_positional_encoding.1
= control target key start
LH: loop header
LB: loop body
LE: loop exit
PB: predicated region body
PF: predicated region fallthrough
CT: control target
= control target key end

     0   :  { %s31_s0 = inlined_call_operand.vmem [shape: f32[4,128], index: 0, kind: input, shape index: {}, may-alias: {0,1}]   ;;  %s32_s1 = inlined_call_operand.vmem [shape: f32[4,128], index: 1, kind: output, shape index: {}, may-alias: {0,1}]  }
   0x1   :  { %v8_v0 = vld [vmem:[%s31_s0] sm:$0xf] }
   0x2   :  { %v9_v1 = vmul.f32 5.656854, %v8_v0 }
   0x4   :  { %10 = vst [vmem:[%s32_s1] sm:$0xf] %v9_v1 }

</bundles_post_ra>
